<compile_context>
chip_gen: v5e
topology: v5e:2x2
jax: 0.10.0
libtpu: 0.0.40
codegen_flags: <defaults>
</compile_context>

<pallas_src>
import functools
import inspect

import jax
import jax.numpy as jnp
from jax.experimental import pallas as pl
from jax.experimental.pallas import tpu as pltpu

_NEG_BIG = -1e30  # finite "-inf" stand-in (avoids inf-inf NaNs in the online LSE)


def _round_up(x, m):
    return ((x + m - 1) // m) * m


def _vmem_budget_bytes():
    """~3/4 of this generation's physical VMEM (≈48 MiB on v7x, ≈96 MiB on v5e/v6e)."""
    cap = 64 * 1024 * 1024  # conservative fallback: v7x per-TC capacity
    try:
        cap = int(pltpu.get_tpu_info().vmem_capacity_bytes)
    except Exception:
        pass
    return (cap * 3) // 4


def _select_tiles(n, b, c, itemsize, max_tb, max_tc, n_buf, budget):
    """Pick (TB, TC): as large as possible, VMEM-budgeted, megacore-balanced.

    No divisibility requirement against B/C -- the grid uses pl.cdiv and the
    kernel masks the class tail tile, so TB/TC only need (16, 128) alignment.
    """
    tc = min(_round_up(c, 128), max(128, (max_tc // 128) * 128))
    tb = min(_round_up(b, 16), max(16, (max_tb // 16) * 16))

    def logits_bytes(tb_, tc_):
        return n_buf * tb_ * tc_ * itemsize

    # Leave ~1/4 of the budget for target/output buffers, scratch and slack.
    while logits_bytes(tb, tc) > (budget * 3) // 4 and tc > 128:
        tc = max(128, _round_up(tc // 2, 128))
    while logits_bytes(tb, tc) > (budget * 3) // 4 and tb > 16:
        tb = max(16, _round_up(tb // 2, 16))

    # v7x megacore balance: the two "parallel" grid axes (level, batch tile)
    # are what gets sharded across the 2 TensorCores -- keep >= 4 such blocks
    # when possible (grow TC instead of TB if this bites).
    while n * ((b + tb - 1) // tb) < 4 and tb > 16:
        tb = max(16, _round_up(tb // 2, 16))
    return tb, tc


def _mrl_ce_kernel(logits_ref, tgt_ref, out_ref, m_ref, l_ref, pick_ref, *,
                   num_classes):
    """One grid step = one (level, batch-tile, class-tile) block.

    Streams a log-sum-exp over the class tiles (innermost grid axis) and
    accumulates the target logit in scratch; on the last class tile it writes
    per-row CE = lse - target_logit to the output block (write-once).
    """
    ci = pl.program_id(2)
    num_c = pl.num_programs(2)
    tb, tc = logits_ref.shape

    @pl.when(ci == 0)
    def _():
        m_ref[...] = jnp.full(m_ref.shape, _NEG_BIG, dtype=m_ref.dtype)
        l_ref[...] = jnp.zeros(l_ref.shape, dtype=l_ref.dtype)
        pick_ref[...] = jnp.zeros(pick_ref.shape, dtype=pick_ref.dtype)

    # One (TB, TC) logits tile; bf16 inputs are upcast here (per-tile, in vregs).
    x = logits_ref[...].astype(jnp.float32)

    # Global class index of each lane in this tile (also used by the pick).
    col = jax.lax.broadcasted_iota(jnp.int32, (1, tc), 1) + ci * tc  # (1, TC)

    # Mask the ragged class tail; num_classes/tc are static, so this code (and
    # its VPU cost) only exists at all when C is not a multiple of TC.
    if num_classes % tc != 0:
        x = jnp.where(col < num_classes, x, _NEG_BIG)

    # --- online log-sum-exp over the class axis ------------------------------
    m_prev = m_ref[...]                                             # (TB, 1)
    m_new = jnp.maximum(m_prev, jnp.max(x, axis=-1, keepdims=True))
    l_ref[...] = jnp.exp(m_prev - m_new) * l_ref[...] + jnp.sum(
        jnp.exp(x - m_new), axis=-1, keepdims=True)
    m_ref[...] = m_new

    # --- fused target-logit pick for this class tile (into scratch) ----------
    hit = col == tgt_ref[...]                           # (TB, TC) via broadcast
    pick_ref[...] += jnp.sum(jnp.where(hit, x, 0.0), axis=-1, keepdims=True)

    # --- finalize: per-row CE = lse - target_logit, single output write ------
    @pl.when(ci == num_c - 1)
    def _():
        out_ref[...] = m_ref[...] + jnp.log(l_ref[...]) - pick_ref[...]


def _logits_spec(tb, tc, n_buf):
    kwargs = {}
    if n_buf > 2 and hasattr(pl, "Buffered"):
        try:
            if "pipeline_mode" in inspect.signature(pl.BlockSpec).parameters:
                kwargs["pipeline_mode"] = pl.Buffered(n_buf)
        except (TypeError, ValueError):
            pass
    return pl.BlockSpec((None, tb, tc), lambda ni, bi, ci: (ni, bi, ci), **kwargs)


def matryoshka_ce_loss(output, target, relative_importance=None, *,
                       max_tb=256, max_tc=8192, logit_buffers=3):
    """output: (N, B, C) logits (f32 or bf16) or a list of N (B, C) arrays;
    target: (B,) int class indices.

    Returns scalar f32: sum_i rel[i] * mean-CE(output[i], target).
    Feeding bf16 logits halves HBM traffic; compute stays f32 in the kernel.
    """
    if isinstance(output, (list, tuple)):
        output = jnp.stack([jnp.asarray(o) for o in output], axis=0)
    else:
        output = jnp.asarray(output)
    n, b, c = output.shape

    if relative_importance is None:
        rel = jnp.ones((n,), dtype=jnp.float32)
    else:
        rel = jnp.asarray(relative_importance, dtype=jnp.float32)

    tgt = jnp.asarray(target).astype(jnp.int32).reshape(b, 1)

    budget = _vmem_budget_bytes()
    itemsize = jnp.dtype(output.dtype).itemsize
    n_buf = max(2, int(logit_buffers))
    tb, tc = _select_tiles(n, b, c, itemsize, max_tb, max_tc, n_buf, budget)
    grid = (n, pl.cdiv(b, tb), pl.cdiv(c, tc))

    kernel = functools.partial(_mrl_ce_kernel, num_classes=c)

    def run(num_buffers):
        return pl.pallas_call(
            kernel,
            out_shape=jax.ShapeDtypeStruct((n, b, 1), jnp.float32),
            grid=grid,
            in_specs=[
                # one (TB, TC) logits tile per step; leading level dim squeezed
                _logits_spec(tb, tc, num_buffers),
                # matching (TB, 1) target slice
                pl.BlockSpec((tb, 1), lambda ni, bi, ci: (bi, 0)),
            ],
            out_specs=pl.BlockSpec((None, tb, 1), lambda ni, bi, ci: (ni, bi, 0)),
            scratch_shapes=[pltpu.VMEM((tb, 1), jnp.float32),   # running max
                            pltpu.VMEM((tb, 1), jnp.float32),   # running sum
                            pltpu.VMEM((tb, 1), jnp.float32)],  # target-logit acc
            compiler_params=pltpu.CompilerParams(
                dimension_semantics=("parallel", "parallel", "arbitrary"),
                vmem_limit_bytes=budget,
            ),
        )(output, tgt)

    try:
        per_row = run(n_buf)                    # (N, B, 1) per-row CE
    except Exception:
        if n_buf <= 2:
            raise
        per_row = run(2)                        # fall back to double-buffering

    # Tiny rel-weighted mean reduction left to XLA.
    ce_mean = jnp.mean(per_row[..., 0], axis=-1)                    # (N,)
    return jnp.sum(rel * ce_mean)


if __name__ == "__main__":
    key = jax.random.PRNGKey(0)
    k1, k2, k3, k4 = jax.random.split(key, 4)

    def ref_loss(logits, target, rel):
        # Pure-JAX reference: same math as nn.CrossEntropyLoss (mean reduction).
        logp = jax.nn.log_softmax(logits.astype(jnp.float32), axis=-1)
        picked = jnp.take_along_axis(logp, target[None, :, None], axis=-1)[..., 0]
        return jnp.sum(rel * (-picked.mean(axis=-1)))

    # --- Test 1: aligned shapes, f32, small tiles so the streaming LSE path
    # (grid = (4, 1, 2)) is actually exercised. ------------------------------
    N, B, C = 4, 16, 256
    logits = jax.random.normal(k1, (N, B, C), dtype=jnp.float32)
    target = jax.random.randint(k2, (B,), 0, C, dtype=jnp.int32)
    rel = jnp.array([1.0, 0.5, 0.25, 0.125], dtype=jnp.float32)

    loss = jax.block_until_ready(
        matryoshka_ce_loss(logits, target, rel, max_tb=16, max_tc=128))
    ref = ref_loss(logits, target, rel)
    assert jnp.allclose(loss, ref, rtol=1e-5, atol=1e-5), (loss, ref)

    # --- Test 2: ragged shapes (B, C not multiples of 8/128) exercise the
    # pl.cdiv grid + in-kernel class-tail masking + discarded batch-tail rows;
    # bf16 logits exercise the low-HBM-traffic path (per-tile upcast). -------
    N2, B2, C2 = 3, 13, 200
    logits2 = jax.random.normal(k3, (N2, B2, C2), dtype=jnp.float32)
    logits2_bf16 = logits2.astype(jnp.bfloat16)
    target2 = jax.random.randint(k4, (B2,), 0, C2, dtype=jnp.int32)
    rel2 = jnp.array([1.0, 0.7, 0.3], dtype=jnp.float32)

    loss2 = jax.block_until_ready(
        matryoshka_ce_loss(logits2_bf16, target2, rel2, max_tb=16, max_tc=128))
    ref2 = ref_loss(logits2_bf16, target2, rel2)
    assert jnp.allclose(loss2, ref2, rtol=1e-4, atol=1e-4), (loss2, ref2)

    print("KERNEL_OK")
</pallas_src>

<mosaic_0001>
module attributes {stable_mosaic.version = 11 : i64} {
  func.func @_mrl_ce_kernel(%arg0: i32, %arg1: i32, %arg2: i32, %arg3: memref<1x16x128xf32, #tpu.memory_space<vmem>>, %arg4: memref<16x1xi32, #tpu.memory_space<vmem>>, %arg5: memref<1x16x1xf32, #tpu.memory_space<vmem>>, %arg6: memref<16x1xf32, #tpu.memory_space<vmem>>, %arg7: memref<16x1xf32, #tpu.memory_space<vmem>>, %arg8: memref<16x1xf32, #tpu.memory_space<vmem>>) attributes {dimension_semantics = [#tpu.dimension_semantics<parallel>, #tpu.dimension_semantics<parallel>, #tpu.dimension_semantics<arbitrary>], iteration_bounds = array<i64: 4, 1, 2>, scalar_prefetch = 0 : i64, scratch_operands = 3 : i64, tpu.core_type = #tpu.core_type<tc>, window_params = [{transform_indices = @transform_0, window_bounds = array<i64: 1, 16, 128>}, {transform_indices = @transform_1, window_bounds = array<i64: 16, 1>}, {transform_indices = @transform_2, window_bounds = array<i64: 1, 16, 1>}]} {
    %c0_i32 = arith.constant 0 : i32
    %0 = arith.cmpi eq, %arg2, %c0_i32 : i32
    %1 = arith.extui %0 : i1 to i32
    %c0_i32_0 = arith.constant 0 : i32
    %2 = arith.cmpi ne, %1, %c0_i32_0 : i32
    scf.if %2 {
      %cst_21 = arith.constant -1.000000e+30 : f32
      %39 = vector.broadcast %cst_21 : f32 to vector<16x1xf32>
      %c0_22 = arith.constant 0 : index
      %c0_23 = arith.constant 0 : index
      %40 = vector.load %arg6[%c0_22, %c0_23] : memref<16x1xf32, #tpu.memory_space<vmem>>, vector<16x1xf32>
      tpu.vector_store %arg6[%c0_22, %c0_23], %39 {strides = array<i32>} : memref<16x1xf32, #tpu.memory_space<vmem>>, vector<16x1xf32>,
      %cst_24 = arith.constant 0.000000e+00 : f32
      %41 = vector.broadcast %cst_24 : f32 to vector<16x1xf32>
      %c0_25 = arith.constant 0 : index
      %c0_26 = arith.constant 0 : index
      %42 = vector.load %arg7[%c0_25, %c0_26] : memref<16x1xf32, #tpu.memory_space<vmem>>, vector<16x1xf32>
      tpu.vector_store %arg7[%c0_25, %c0_26], %41 {strides = array<i32>} : memref<16x1xf32, #tpu.memory_space<vmem>>, vector<16x1xf32>,
      %cst_27 = arith.constant 0.000000e+00 : f32
      %43 = vector.broadcast %cst_27 : f32 to vector<16x1xf32>
      %c0_28 = arith.constant 0 : index
      %c0_29 = arith.constant 0 : index
      %44 = vector.load %arg8[%c0_28, %c0_29] : memref<16x1xf32, #tpu.memory_space<vmem>>, vector<16x1xf32>
      tpu.vector_store %arg8[%c0_28, %c0_29], %43 {strides = array<i32>} : memref<16x1xf32, #tpu.memory_space<vmem>>, vector<16x1xf32>,
    } else {
    }
    %c0 = arith.constant 0 : index
    %c0_1 = arith.constant 0 : index
    %c0_2 = arith.constant 0 : index
    %3 = vector.load %arg3[%c0, %c0_1, %c0_2] : memref<1x16x128xf32, #tpu.memory_space<vmem>>, vector<1x16x128xf32>
    %4 = vector.shape_cast %3 : vector<1x16x128xf32> to vector<16x128xf32>
    %5 = tpu.iota {dimensions = array<i32: 1>} : vector<1x128xi32>
    %c128_i32 = arith.constant 128 : i32
    %6 = arith.muli %arg2, %c128_i32 : i32
    %7 = vector.broadcast %6 : i32 to vector<1x128xi32>
    %8 = arith.addi %5, %7 : vector<1x128xi32>
    %c0_3 = arith.constant 0 : index
    %c0_4 = arith.constant 0 : index
    %9 = vector.load %arg6[%c0_3, %c0_4] : memref<16x1xf32, #tpu.memory_space<vmem>>, vector<16x1xf32>
    %cst = arith.constant dense<0xFF800000> : vector<16xf32>
    %10 = vector.multi_reduction <maximumf>, %4, %cst [1] : vector<16x128xf32> to vector<16xf32>
    %11 = vector.shape_cast %10 : vector<16xf32> to vector<16x1xf32>
    %12 = arith.maximumf %9, %11 : vector<16x1xf32>
    %13 = arith.subf %9, %12 : vector<16x1xf32>
    %14 = math.exp %13 : vector<16x1xf32>
    %c0_5 = arith.constant 0 : index
    %c0_6 = arith.constant 0 : index
    %15 = vector.load %arg7[%c0_5, %c0_6] : memref<16x1xf32, #tpu.memory_space<vmem>>, vector<16x1xf32>
    %16 = arith.mulf %14, %15 : vector<16x1xf32>
    %17 = vector.broadcast %12 : vector<16x1xf32> to vector<16x128xf32>
    %18 = arith.subf %4, %17 : vector<16x128xf32>
    %19 = math.exp %18 : vector<16x128xf32>
    %cst_7 = arith.constant dense<0.000000e+00> : vector<16xf32>
    %20 = vector.multi_reduction <add>, %19, %cst_7 [1] : vector<16x128xf32> to vector<16xf32>
    %21 = vector.shape_cast %20 : vector<16xf32> to vector<16x1xf32>
    %22 = arith.addf %16, %21 : vector<16x1xf32>
    %c0_8 = arith.constant 0 : index
    %c0_9 = arith.constant 0 : index
    %23 = vector.load %arg7[%c0_8, %c0_9] : memref<16x1xf32, #tpu.memory_space<vmem>>, vector<16x1xf32>
    tpu.vector_store %arg7[%c0_8, %c0_9], %22 {strides = array<i32>} : memref<16x1xf32, #tpu.memory_space<vmem>>, vector<16x1xf32>,
    %c0_10 = arith.constant 0 : index
    %c0_11 = arith.constant 0 : index
    %24 = vector.load %arg6[%c0_10, %c0_11] : memref<16x1xf32, #tpu.memory_space<vmem>>, vector<16x1xf32>
    tpu.vector_store %arg6[%c0_10, %c0_11], %12 {strides = array<i32>} : memref<16x1xf32, #tpu.memory_space<vmem>>, vector<16x1xf32>,
    %c0_12 = arith.constant 0 : index
    %c0_13 = arith.constant 0 : index
    %25 = vector.load %arg4[%c0_12, %c0_13] : memref<16x1xi32, #tpu.memory_space<vmem>>, vector<16x1xi32>
    %26 = vector.broadcast %8 : vector<1x128xi32> to vector<16x128xi32>
    %27 = vector.broadcast %25 : vector<16x1xi32> to vector<16x128xi32>
    %28 = arith.cmpi eq, %26, %27 : vector<16x128xi32>
    %c0_14 = arith.constant 0 : index
    %c0_15 = arith.constant 0 : index
    %29 = vector.load %arg8[%c0_14, %c0_15] : memref<16x1xf32, #tpu.memory_space<vmem>>, vector<16x1xf32>
    %cst_16 = arith.constant 0.000000e+00 : f32
    %30 = vector.broadcast %cst_16 : f32 to vector<16x128xf32>
    %31 = arith.select %28, %4, %30 : vector<16x128xi1>, vector<16x128xf32>
    %cst_17 = arith.constant dense<0.000000e+00> : vector<16xf32>
    %32 = vector.multi_reduction <add>, %31, %cst_17 [1] : vector<16x128xf32> to vector<16xf32>
    %33 = vector.shape_cast %32 : vector<16xf32> to vector<16x1xf32>
    %34 = arith.addf %29, %33 : vector<16x1xf32>
    %c0_18 = arith.constant 0 : index
    %c0_19 = arith.constant 0 : index
    %35 = vector.load %arg8[%c0_18, %c0_19] : memref<16x1xf32, #tpu.memory_space<vmem>>, vector<16x1xf32>
    tpu.vector_store %arg8[%c0_18, %c0_19], %34 {strides = array<i32>} : memref<16x1xf32, #tpu.memory_space<vmem>>, vector<16x1xf32>,
    %c1_i32 = arith.constant 1 : i32
    %36 = arith.cmpi eq, %arg2, %c1_i32 : i32
    %37 = arith.extui %36 : i1 to i32
    %c0_i32_20 = arith.constant 0 : i32
    %38 = arith.cmpi ne, %37, %c0_i32_20 : i32
    scf.if %38 {
      %c0_21 = arith.constant 0 : index
      %c0_22 = arith.constant 0 : index
      %39 = vector.load %arg6[%c0_21, %c0_22] : memref<16x1xf32, #tpu.memory_space<vmem>>, vector<16x1xf32>
      %c0_23 = arith.constant 0 : index
      %c0_24 = arith.constant 0 : index
      %40 = vector.load %arg7[%c0_23, %c0_24] : memref<16x1xf32, #tpu.memory_space<vmem>>, vector<16x1xf32>
      %41 = math.log %40 : vector<16x1xf32>
      %42 = arith.addf %39, %41 : vector<16x1xf32>
      %c0_25 = arith.constant 0 : index
      %c0_26 = arith.constant 0 : index
      %43 = vector.load %arg8[%c0_25, %c0_26] : memref<16x1xf32, #tpu.memory_space<vmem>>, vector<16x1xf32>
      %44 = arith.subf %42, %43 : vector<16x1xf32>
      %c0_27 = arith.constant 0 : index
      %c0_28 = arith.constant 0 : index
      %c0_29 = arith.constant 0 : index
      %45 = vector.load %arg5[%c0_27, %c0_28, %c0_29] : memref<1x16x1xf32, #tpu.memory_space<vmem>>, vector<1x16x1xf32>
      %46 = vector.shape_cast %45 : vector<1x16x1xf32> to vector<16x1xf32>
      %47 = vector.shape_cast %44 : vector<16x1xf32> to vector<1x16x1xf32>
      tpu.vector_store %arg5[%c0_27, %c0_28, %c0_29], %47 {strides = array<i32>} : memref<1x16x1xf32, #tpu.memory_space<vmem>>, vector<1x16x1xf32>,
    } else {
    }
    return
  }
  func.func @transform_0(%arg0: i32, %arg1: i32, %arg2: i32) -> (i32, i32, i32) {
    %c0_i32 = arith.constant 0 : i32
    return %arg0, %arg1, %arg2 : i32, i32, i32
  }
  func.func @transform_1(%arg0: i32, %arg1: i32, %arg2: i32) -> (i32, i32) {
    %c0_i32 = arith.constant 0 : i32
    %c0_i32_0 = arith.constant 0 : i32
    return %arg1, %c0_i32 : i32, i32
  }
  func.func @transform_2(%arg0: i32, %arg1: i32, %arg2: i32) -> (i32, i32, i32) {
    %c0_i32 = arith.constant 0 : i32
    %c0_i32_0 = arith.constant 0 : i32
    return %arg0, %arg1, %c0_i32 : i32, i32, i32
  }
}

</mosaic_0001>

<bundles_post_ra>
// kernel: tpu_custom_call.1
= control target key start
LH: loop header
LB: loop body
LE: loop exit
PB: predicated region body
PF: predicated region fallthrough
CT: control target
= control target key end

     0   :  { %7 = vsyncpa [#allocation6], 0  ;;  %s812_s0 = inlined_call_operand.hbm [shape: f32[4,16,256], index: 0, kind: input, shape index: {}]   ;;  %s813_s1 = inlined_call_operand.vmem [shape: s32[16,1], index: 1, kind: input, shape index: {}]   ;;  %s814_s2 = inlined_call_operand.vmem [shape: f32[4,16,1], index: 2, kind: output, shape index: {}]  }
   0x1   :  { %9 = vsyncpa [#allocation6 + $0x1], 0  ;;  %s678_s9 = smov 0   ;;  %s680_s10 = smov 0  }
   0x2   :  { %s682_s11 = smov 0   ;;  %s684_s12 = smov 0  }
   0x3   :  { %s686_s13 = smov 0   ;;  %s688_s14 = smov 0  }
   0x4   :  { %s690_s15 = smov 0   ;;  %s692_s16 = smov 0  }
   0x5 LB: > { %s449_s17 = sadd.s32 4294967295, %s655_s16   ;;  %s27_s18 = sadd.s32 1, %s647_s14  ;;  %s655_s16 = sphi %s692_s16, %s15_s16   ;;  %s651_s15 = sphi %s690_s15, %s823_s15   ;;  %s647_s14 = sphi %s688_s14, %s822_s14   ;;  %s643_s13 = sphi %s686_s13, %s821_s13   ;;  %s639_s12 = sphi %s684_s12, %s820_s12   ;;  %s635_s11 = sphi %s682_s11, %s819_s11   ;;  %s631_s10 = sphi %s680_s10, %s818_s10   ;;  %s627_s9 = sphi %s678_s9, %s817_s9  }
   0x6   : > { %p28_p0 = scmp.ge.s32.totalorder %s27_s18, 2  ;;  %s34_s19 = sadd.s32 1, %s651_s15 }
   0x7   : > { %s45_s20 = sadd.s32 1, %s635_s11  ;;  %p52_p1 = scmp.ne.s32.totalorder %s635_s11, %s631_s10 }
   0x8   : > { %s825_s18 = smov (%p28_p0, %s27_s18), 0  ;;  %s827_s19 = smov (!%p28_p0, %s34_s19), %s651_s15 }
   0x9   : > { %s41_s21 = ssub.s32 %s647_s14, %s825_s18  ;;  %p53_p2 = scmp.eq.s32.totalorder %s655_s16, 0 }
   0xa   : > { %p36_p3 = scmp.ge.s32.totalorder %s827_s19, 4  ;;  %p58_p4 = scmp.ne.s32.totalorder %s631_s10, %s627_s9 }
   0xb   : > { %p729_p5 = por %p53_p2, %p52_p1  ;;  %p59_p6 = scmp.eq.s32.totalorder %s449_s17, 0 }
   0xc   : > { %s829_s19 = smov (%p36_p3, %s827_s19), 0  ;;  %p473_p8 = scmp.lt.s32.totalorder %s655_s16, 8 }
   0xd   : > { %p735_p7 = por %p59_p6, %p58_p4  ;;  %s38_s24 = ssub.s32 %s651_s15, %s829_s19 }
   0xe   : > { %s42_s25 = sor.u32 %s41_s21, %s38_s24  ;;  %s145_s26 = sand.u32 1, %s635_s11  }
   0xf   : > { %p43_p9 = scmp.eq.s32.totalorder %s42_s25, 0  ;;  %s454_s27 = sshll.u32 %s145_s26, 4 }
  0x10   : > { %s455_s28 = sshll.u32 %s651_s15, 2  ;;  %s149_s4 = scalar_lea.vmem [#allocation5], %s454_s27 }
  0x11   : > { %s745_s29 = scalar_select %p43_p9, %s635_s11, %s45_s20  }
  0x12   : > { %s156_s30 = sadd.s32 %s647_s14, %s455_s28  ;;  %s161_s5 = sshll.u32 %s149_s4, 4  ;;  %s162_s5 = int_to_ptr.vmem [resolvable:$true] %s161_s5 }
  0x13   : > { %s456_s3 = sshll.u32 %s156_s30, 3  ;;  %p470_p10 = pnand %p473_p8, %p729_p5 }
  0x14   : > { %s158_s8 = scalar_lea.hbm %s812_s0, %s456_s3  ;;  %p457_p11 = scmp.ge.s32.totalorder %s655_s16, 1 }
  0x15   : > { %s159_s9 = sshll.u32 %s158_s8, 4  ;;  %s146_s17 = scalar_lea.sflag [#allocation6], %s145_s26  ;;  %s160_s9 = int_to_ptr.hbm [resolvable:$true] %s159_s9 }
  0x16   : > { %s657_s21 = smov 256   ;;  %s658_s20 = smov 128  }
  0x17   : > { %s659_s24 = smov 8   ;;  %p169_p12 = scmp.lt.s32.totalorder %s655_s16, 9 }
  0x18   : > { %472 = dma.hbm_to_vmem [thread:$0]  (!%p470_p10), %s160_s9, 256, %s162_s5, %s146_s17, %s657_s21, %s658_s20, %s659_s24  }
  0x19   : > { %p170_p13 = pnand %p457_p11, %p169_p12 }
  0x1a   : > { %s175_s25 = sand.u32 (!%p170_p13), 1, %s631_s10  }
  0x1b   : > { %173 = sbr.rel (%p170_p13) target bundleno = 440 (0x1b8), region = 28  ;;  %s458_s27 = sshll.u32 (!%p170_p13), %s175_s25, 4 }
  0x1c   : > { %s176_s28 = scalar_lea.sflag (!%p170_p13), [#allocation6], %s175_s25  ;;  %s179_s30 = scalar_lea.vmem (!%p170_p13), [#allocation5], %s458_s27 }
  0x20   : > { %622 = dma.done.wait (%p735_p7), %s176_s28, 256  }
  0x21   : > { %624 = vsyncadd (%p735_p7), %s176_s28, 4294967040  ;;  %p218_p0 = scmp.lt.s32.totalorder %s643_s13, 3  ;;  %p461_p1 = scmp.ne.s32.totalorder %s639_s12, 0 }
  0x23   : > { %s831_s13 = smov (!%p218_p0, %s643_s13), 3  ;;  %230 = sbr.rel (%p461_p1) target bundleno = 47 (0x2f), region = 36 }
  0x24   : > { %s466_s22 = sshll.u32 %s831_s13, 4 }
  0x25   : > { %s767_s4 = scalar_lea.vmem %s814_s2, %s466_s22 }
  0x28   : > { %vm231_vm0 = vcmask 7168   ;;  %v660_v0 = vmov -1e+30   ;;  %v661_v1 = vmov 0.0  }
  0x29   : > { %232 = vst.msk [vmem:[#allocation2] sm:$0xff] %vm231_vm0, %v660_v0 }
  0x2a   : > { %233 = vst.msk [vmem:[#allocation2 + $0x8] sm:$0xff] %vm231_vm0, %v660_v0 }
  0x2b   : > { %234 = vst.msk [vmem:[#allocation3] sm:$0xff] %vm231_vm0, %v661_v1 }
  0x2c   : > { %235 = vst.msk [vmem:[#allocation3 + $0x8] sm:$0xff] %vm231_vm0, %v661_v1 }
  0x2d   : > { %236 = vst.msk [vmem:[#allocation4] sm:$0xff] %vm231_vm0, %v661_v1 }
  0x2e   : > { %237 = vst.msk [vmem:[#allocation4 + $0x8] sm:$0xff] %vm231_vm0, %v661_v1 }
  0x2f PF: > { %v238_v2 = vld [vmem:[%s179_s30] sm:$0xff]  ;;  %v239_v3 = vld [vmem:[%s179_s30 + $0x8] sm:$0xff]  ;;  %v662_v4 = vmov 0   ;;  %vm285_vm1 = vcmask 7168   ;;  %s462_s7 = sshll.u32 %s639_s12, 7  ;;  %v240_v15 = vlaneseq  ;;  %p463_p2 = scmp.ne.s32.totalorder %s639_s12, 1 }
  0x30   : > { %247 = vmax.xlane.f32.xlu0 %v238_v2  ;;  %544 = vset.pattern.permute.xlu1 %v662_v4  ;;  %v290_v5 = vld [vmem:[%s813_s1] sm:$0xff]  ;;  %v291_v6 = vld [vmem:[%s813_s1 + $0x8] sm:$0xff]  ;;  %v243_v16 = vstv %s462_s7 }
  0x31   : > { %545 = vset.pattern.permute.xlu2 %v662_v4  ;;  %546 = vset.pattern.permute.xlu0 %v662_v4  ;;  %v245_v7 = vld [vmem:[#allocation2] sm:$0xff]  ;;  %v246_v11 = vld [vmem:[#allocation2 + $0x8] sm:$0xff]  ;;  %v241_v17 = vand.u32 127, %v240_v15 }
  0x32   : > { %293 = vperm.xlu2 %545, %v290_v5   ;;  %v259_v37 = vld [vmem:[#allocation3] sm:$0xff] }
  0x33   : > { %v244_v18 = vadd.s32 %v243_v16, %v241_v17  ;;  %v260_v42 = vld [vmem:[#allocation3 + $0x8] sm:$0xff] }
  0x34   : > { %v300_v31 = vld [vmem:[#allocation4] sm:$0xff] }
  0x35   : > { %v301_v43 = vld [vmem:[#allocation4 + $0x8] sm:$0xff] }
  0x38   : > { %249 = vmax.xlane.f32.xlu0 %v239_v3 }
  0x3a   : > { %296 = vperm.xlu2 %545, %v291_v6  }
  0x8c   : > { %v294_v19 = vpop.permute.xlu2 %293 }
  0x8d   : > { %vm298_vm2 = vcmp.eq.s32.totalorder %v244_v18, %v294_v19 }
  0x8e   : > { %v302_v20 = vsel %vm298_vm2, %v238_v2, 0.0 }
  0x8f   : > { %304 = vadd.xlane.f32.xlu2 %v302_v20 }
  0x94   : > { %v297_v28 = vpop.permute.xlu2 %296 }
  0x95   : > { %vm299_vm3 = vcmp.eq.s32.totalorder %v244_v18, %v297_v28 }
  0x96   : > { %v303_v30 = vsel %vm299_vm3, %v239_v3, 0.0 }
  0xa3   : > { %v248_v8 = vpop.xlane.xlu0 %247 }
  0xa4   : > { %v251_v9 = vmax.f32 %v245_v7, %v248_v8 }
  0xa6   : > { %v253_v10 = vsub.f32 %v245_v7, %v251_v9  ;;  %288 = vst.msk [vmem:[#allocation2] sm:$0xff] %vm285_vm1, %v251_v9  ;;  %265 = vperm.xlu1 %544, %v251_v9  }
  0xa8   : > { %v255_v34 = vmul.f32 1.442695, %v253_v10 }
  0xab   : > { %v250_v12 = vpop.xlane.xlu0 %249 }
  0xac   : > { %v252_v13 = vmax.f32 %v246_v11, %v250_v12 }
  0xae   : > { %v254_v14 = vsub.f32 %v246_v11, %v252_v13  ;;  %289 = vst.msk [vmem:[#allocation2 + $0x8] sm:$0xff] %vm285_vm1, %v252_v13  ;;  %270 = vperm.xlu1 %544, %v252_v13  }
  0xb0   : > { %v257_v35 = vmul.f32 1.442695, %v254_v14 }
 0x102   : > { %v305_v32 = vpop.xlane.xlu2 %304 }
 0x103   : > { %v308_v33 = vadd.f32 %v305_v32, %v300_v31 }
 0x105   : > { %310 = vst.msk [vmem:[#allocation4] sm:$0xff] %vm285_vm1, %v308_v33 }
 0x118   : > { %v266_v21 = vpop.permute.xlu1 %265 }
 0x119   : > { %v273_v22 = vsub.f32 %v238_v2, %v266_v21 }
 0x11b   : > { %v275_v23 = vmul.f32 1.442695, %v273_v22 }
 0x11d   : > { %547 = vpow2.f32 %v275_v23 }
 0x120   : > { %v271_v24 = vpop.permute.xlu1 %270 }
 0x121   : > { %v274_v25 = vsub.f32 %v239_v3, %v271_v24 }
 0x123   : > { %v548_v26 = vpop.eup %547  ;;  %v277_v27 = vmul.f32 1.442695, %v274_v25 }
 0x124   : > { %279 = vadd.xlane.f32.xlu0 %v548_v26 }
 0x125   : > { %549 = vpow2.f32 %v277_v27 }
 0x126   : > { %551 = vpow2.f32 %v255_v34 }
 0x127   : > { %553 = vpow2.f32 %v257_v35 }
 0x12b   : > { %v550_v29 = vpop.eup %549 }
 0x12c   : > { %306 = vadd.xlane.f32.xlu0 %v303_v30  ;;  %281 = vadd.xlane.f32.xlu1 %v550_v29  ;;  %v552_v36 = vpop.eup %551 }
 0x12d   : > { %v261_v38 = vmul.f32 %v552_v36, %v259_v37  ;;  %v554_v41 = vpop.eup %553 }
 0x12e   : > { %v262_v44 = vmul.f32 %v554_v41, %v260_v42 }
 0x197   : > { %v280_v39 = vpop.xlane.xlu0 %279 }
 0x198   : > { %v283_v40 = vadd.f32 %v280_v39, %v261_v38 }
 0x19a   : > { %286 = vst.msk [vmem:[#allocation3] sm:$0xff] %vm285_vm1, %v283_v40 }
 0x19f   : > { %v282_v45 = vpop.xlane.xlu1 %281  ;;  %v307_v46 = vpop.xlane.xlu0 %306  ;;  %315 = sbr.rel (%p463_p2) target bundleno = 440 (0x1b8), region = 40 }
 0x1a0   : > { %v284_v47 = vadd.f32 %v282_v45, %v262_v44  ;;  %v309_v48 = vadd.f32 %v307_v46, %v301_v43 }
 0x1a2   : > { %287 = vst.msk [vmem:[#allocation3 + $0x8] sm:$0xff] %vm285_vm1, %v284_v47 }
 0x1a3   : > { %311 = vst.msk [vmem:[#allocation4 + $0x8] sm:$0xff] %vm285_vm1, %v309_v48 }
 0x1a4   : > { %v318_v49 = vld [vmem:[#allocation3] sm:$0xff]  ;;  %v316_v52 = vld [vmem:[#allocation2] sm:$0xff]  ;;  %v317_v55 = vld [vmem:[#allocation2 + $0x8] sm:$0xff] }
 0x1a5   : > { %555 = vlog2.f32 %v318_v49  ;;  %v326_v56 = vld [vmem:[#allocation4] sm:$0xff] }
 0x1a9   : > { %v319_v50 = vld [vmem:[#allocation3 + $0x8] sm:$0xff] }
 0x1aa   : > { %557 = vlog2.f32 %v319_v50  ;;  %v327_v59 = vld [vmem:[#allocation4 + $0x8] sm:$0xff] }
 0x1ab   : > { %v556_v51 = vpop.eup %555 }
 0x1ac   : > { %v321_v54 = vmul.f32 0.6931472, %v556_v51 }
 0x1ae   : > { %v324_v58 = vadd.f32 %v321_v54, %v316_v52 }
 0x1b0   : > { %v558_v53 = vpop.eup %557  ;;  %v328_v61 = vsub.f32 %v324_v58, %v326_v56 }
 0x1b1   : > { %v323_v57 = vmul.f32 0.6931472, %v558_v53 }
 0x1b2   : > { %330 = vst.msk [vmem:[%s767_s4] sm:$0xff] %vm285_vm1, %v328_v61 }
 0x1b3   : > { %v325_v60 = vadd.f32 %v323_v57, %v317_v55 }
 0x1b5   : > { %v329_v62 = vsub.f32 %v325_v60, %v327_v59 }
 0x1b7   : > { %331 = vst.msk [vmem:[%s767_s4 + $0x8] sm:$0xff] %vm285_vm1, %v329_v62 }
 0x1b8 PF: > { %s15_s16 = sadd.s32 1, %s655_s16   ;;  %s817_s9 = smov %s631_s10 }
 0x1b9   : > { %p12_p3 = scmp.ge.s32.totalorder %s15_s16, 10   ;;  %s818_s10 = smov %s635_s11 }
 0x1ba   : > { %s819_s11 = smov %s745_s29  ;;  %s820_s12 = smov %s647_s14 }
 0x1bb   : > { %s821_s13 = smov %s651_s15  ;;  %s822_s14 = smov %s825_s18 }
 0x1bc   : > { %s823_s15 = smov %s829_s19  ;;  %14 = sbr.rel (!%p12_p3) target bundleno = 5 (0x5), region = 79 }
 0x1c1   :  { %362 = vsyncpa [#allocation6], 1 }
 0x1c2   :  { %364 = vsyncpa [#allocation6 + $0x1], 1 }

</bundles_post_ra>
